<compile_context>
chip_gen: v7x
topology: tpu7x:2x2x1
jax: 0.10.0
libtpu: 0.0.40
codegen_flags: <defaults>
</compile_context>

<pallas_src>
import jax
import jax.numpy as jnp
from jax.experimental import pallas as pl
from jax.experimental.pallas import tpu as pltpu


def _fcn_kernel(xT_ref, w1_ref, b1_ref, w2_ref, b2_ref, oT_ref):
    # Transposed layout: batch on the lane axis, features on sublanes.
    #   xT_ref: (n_k, Bblk)   w1_ref: (H, n_k)   b1_ref: (H, 1)
    #   w2_ref: (K, H)        b2_ref: (K, 1)     oT_ref: (K, Bblk)
    xT = xT_ref[...]

    # Linear 1 + ReLU6  ->  (H, Bblk), fully lane-dense when Bblk % 128 == 0.
    h = jnp.dot(w1_ref[...], xT, preferred_element_type=jnp.float32) + b1_ref[...]
    h = jnp.clip(h, 0.0, 6.0)

    # Linear 2  ->  (K, Bblk)
    z = jnp.dot(w2_ref[...], h, preferred_element_type=jnp.float32) + b2_ref[...]

    # Softmax over the feature axis (axis 0 = sublanes), numerically stable.
    # Exact normalization: reciprocal computed once on the (1, Bblk) row-sum,
    # then broadcast-multiplied, so each output column sums to 1 to f32 rounding.
    z = z - jnp.max(z, axis=0, keepdims=True)
    e = jnp.exp(z)
    denom = jnp.sum(e, axis=0, keepdims=True)        # (1, Bblk)
    inv = 1.0 / denom                                # exact (tiny: one row)
    oT_ref[...] = (e * inv).astype(oT_ref.dtype)


def prepare_params(w1, b1, w2, b2):
    """One-time layout prep (outside the per-call hot path).

    PyTorch Linear stores weights as (out, in), which is exactly the layout the
    transposed (features-on-sublanes) kernel wants, so no transposes are needed;
    only the biases become column vectors.
    Returns (w1 (H, n_k), b1 (H, 1), w2 (K, H), b2 (K, 1)).
    """
    return (
        w1,                        # (H, n_k)
        b1.reshape(-1, 1),         # (H, 1)
        w2,                        # (K, H)
        b2.reshape(-1, 1),         # (K, 1)
    )


def _cost_estimate(B, n_k, H, K):
    flops = 2 * B * n_k * H + 2 * B * H * K + 6 * B * (H + K)   # matmuls + bias/relu/softmax
    transcendentals = B * K                                      # exp
    bytes_accessed = 4 * (B * n_k + n_k * H + H + H * K + K + B * K)
    return pl.CostEstimate(flops=flops, transcendentals=transcendentals,
                           bytes_accessed=bytes_accessed)


def self_deblur_kernel_forward(x, w1, b1_col, w2, b2_col, *,
                               batch_block=8192, grid_min_batch=16384):
    """softmax(relu6(x @ W1.T + b1) @ W2.T + b2) with pre-laid-out params.

    x      : (B, n_k) float32
    w1     : (H, n_k)    b1_col : (H, 1)
    w2     : (K, H)      b2_col : (K, 1)
    returns (B, K) float32
    """
    B, n_k = x.shape
    H = w1.shape[0]
    K = w2.shape[0]
    cost = _cost_estimate(B, n_k, H, K)

    # Batch goes on the lane axis; the single cheap transpose lives in the wrapper.
    xT = x.T                                   # (n_k, B)

    if B >= grid_min_batch:
        # Genuinely large batch: pipelined grid over 8192-row blocks.  pl.cdiv +
        # wrapper-side padding handles non-multiples (keeps VMEM bounded, esp. v7x).
        n_blocks = pl.cdiv(B, batch_block)
        Bp = n_blocks * batch_block
        if Bp != B:
            xT = jnp.pad(xT, ((0, 0), (0, Bp - B)))
        outT = pl.pallas_call(
            _fcn_kernel,
            out_shape=jax.ShapeDtypeStruct((K, Bp), jnp.float32),
            grid=(n_blocks,),
            in_specs=[
                pl.BlockSpec((n_k, batch_block), lambda i: (0, i)),
                pl.BlockSpec((H, n_k), lambda i: (0, 0)),
                pl.BlockSpec((H, 1), lambda i: (0, 0)),
                pl.BlockSpec((K, H), lambda i: (0, 0)),
                pl.BlockSpec((K, 1), lambda i: (0, 0)),
            ],
            out_specs=pl.BlockSpec((K, batch_block), lambda i: (0, i)),
            # Only worth megacore-splitting at this scale (>= 16K rows).
            compiler_params=pltpu.CompilerParams(
                dimension_semantics=("parallel",)),
            cost_estimate=cost,
        )(xT, w1, b1_col, w2, b2_col)
        outT = outT[:, :B]
    else:
        # Small/medium batch (the shape SelfDeblur actually uses is B=1-2):
        # one gridless invocation, whole arrays resident in VMEM, no pipeline
        # bookkeeping.  Transposed layout keeps footprint ~0.4 KB/row.
        vmem = pl.BlockSpec(memory_space=pltpu.MemorySpace.VMEM)
        outT = pl.pallas_call(
            _fcn_kernel,
            out_shape=jax.ShapeDtypeStruct((K, B), jnp.float32),
            in_specs=[vmem, vmem, vmem, vmem, vmem],
            out_specs=vmem,
            cost_estimate=cost,
        )(xT, w1, b1_col, w2, b2_col)

    return outT.T                              # (B, K), matches the torch module


def generate_blur_kernel(z_k, params, kernel_shape):
    """Production SelfDeblur path: noise (1, n_k) -> blur kernel (1, 1, kh, kw).

    Folds the downstream view the caller would otherwise do around an already
    launch-bound custom call.
    """
    out = self_deblur_kernel_forward(z_k, *params)         # (1, kh*kw)
    return out.reshape(1, 1, kernel_shape[0], kernel_shape[1])


def _init_linear_params(key, out_features, in_features):
    # Mimic PyTorch default Linear init: U(-1/sqrt(fan_in), 1/sqrt(fan_in)).
    kw, kb = jax.random.split(key)
    bound = 1.0 / jnp.sqrt(jnp.float32(in_features))
    w = jax.random.uniform(kw, (out_features, in_features), jnp.float32,
                           minval=-bound, maxval=bound)
    b = jax.random.uniform(kb, (out_features,), jnp.float32,
                           minval=-bound, maxval=bound)
    return w, b


if __name__ == "__main__":
    # Small shapes consistent with the module:
    #   n_k = 8 input noise channels, hidden = 32, kernel_shape = (4, 4) -> 16 out.
    B, n_k, hidden = 2, 8, 32
    kernel_shape = (4, 4)
    K = kernel_shape[0] * kernel_shape[1]

    key = jax.random.PRNGKey(0)
    k_x, k_l1, k_l2, k_xm, k_xl = jax.random.split(key, 5)

    x = jax.random.normal(k_x, (B, n_k), jnp.float32)
    w1, b1 = _init_linear_params(k_l1, hidden, n_k)
    w2, b2 = _init_linear_params(k_l2, K, hidden)

    # One-time layout prep (outside the per-call hot path).
    params = prepare_params(w1, b1, w2, b2)

    def ref_fn(xi):
        h_ref = jnp.clip(xi @ w1.T + b1, 0.0, 6.0)
        return jax.nn.softmax(h_ref @ w2.T + b2, axis=-1)

    # --- production path: tiny batch, single gridless invocation ---
    out = jax.block_until_ready(self_deblur_kernel_forward(x, *params))
    ref = ref_fn(x)
    assert out.shape == (B, K)
    assert jnp.allclose(out, ref, atol=2e-3, rtol=2e-3)
    # Exact normalization -> sums to one to f32 rounding.
    assert jnp.allclose(jnp.sum(out, axis=-1), jnp.ones((B,)), atol=1e-4)

    # Convenience path: the (1, 1, kh, kw) blur kernel SelfDeblur consumes.
    blur = jax.block_until_ready(generate_blur_kernel(x[:1], params, kernel_shape))
    assert blur.shape == (1, 1) + kernel_shape
    assert jnp.allclose(jnp.sum(blur), 1.0, atol=1e-4)

    # --- medium batch: still gridless; 512 % 128 == 0 so fully lane-dense ---
    Bm = 512
    xm = jax.random.normal(k_xm, (Bm, n_k), jnp.float32)
    outm = jax.block_until_ready(self_deblur_kernel_forward(xm, *params))
    refm = ref_fn(xm)
    assert outm.shape == (Bm, K)
    assert jnp.allclose(outm, refm, atol=2e-3, rtol=2e-3)
    assert jnp.allclose(jnp.sum(outm, axis=-1), jnp.ones((Bm,)), atol=1e-4)

    # --- large batch: gridded path, non-multiple batch exercises pad + slice ---
    Bl = 16384 + 100
    xl = jax.random.normal(k_xl, (Bl, n_k), jnp.float32)
    outl = jax.block_until_ready(self_deblur_kernel_forward(xl, *params))
    refl = ref_fn(xl)
    assert outl.shape == (Bl, K)
    # Slightly looser value tolerance: default-precision f32 matmul rounding over
    # many more samples; normalization itself is exact (next assert).
    assert jnp.allclose(outl, refl, atol=5e-3, rtol=5e-3)
    assert jnp.allclose(jnp.sum(outl, axis=-1), jnp.ones((Bl,)), atol=1e-4)

    print("KERNEL_OK")
</pallas_src>

<mosaic_0001>
module attributes {stable_mosaic.version = 11 : i64} {
  func.func @_fcn_kernel(%arg0: memref<8x2xf32, #tpu.memory_space<vmem>>, %arg1: memref<32x8xf32, #tpu.memory_space<vmem>>, %arg2: memref<32x1xf32, #tpu.memory_space<vmem>>, %arg3: memref<16x32xf32, #tpu.memory_space<vmem>>, %arg4: memref<16x1xf32, #tpu.memory_space<vmem>>, %arg5: memref<16x2xf32, #tpu.memory_space<vmem>>) attributes {dimension_semantics = [], scalar_prefetch = 0 : i64, scratch_operands = 0 : i64, tpu.core_type = #tpu.core_type<tc>} {
    %c0 = arith.constant 0 : index
    %c0_0 = arith.constant 0 : index
    %0 = vector.load %arg0[%c0, %c0_0] : memref<8x2xf32, #tpu.memory_space<vmem>>, vector<8x2xf32>
    %c0_1 = arith.constant 0 : index
    %c0_2 = arith.constant 0 : index
    %1 = vector.load %arg1[%c0_1, %c0_2] : memref<32x8xf32, #tpu.memory_space<vmem>>, vector<32x8xf32>
    %cst = arith.constant dense<0.000000e+00> : vector<32x2xf32>
    %2 = tpu.matmul %1, %0, %cst {dimension_numbers = #tpu.dot_dimension_numbers<[1], [0], [0], [1], [0, 0, 1, 1], [], []>} : vector<32x8xf32>, vector<8x2xf32>, vector<32x2xf32> -> vector<32x2xf32>
    %c0_3 = arith.constant 0 : index
    %c0_4 = arith.constant 0 : index
    %3 = vector.load %arg2[%c0_3, %c0_4] : memref<32x1xf32, #tpu.memory_space<vmem>>, vector<32x1xf32>
    %4 = vector.broadcast %3 : vector<32x1xf32> to vector<32x2xf32>
    %5 = arith.addf %2, %4 : vector<32x2xf32>
    %cst_5 = arith.constant 0.000000e+00 : f32
    %cst_6 = arith.constant 6.000000e+00 : f32
    %6 = vector.broadcast %cst_5 : f32 to vector<32x2xf32>
    %7 = arith.maximumf %6, %5 : vector<32x2xf32>
    %8 = vector.broadcast %cst_6 : f32 to vector<32x2xf32>
    %9 = arith.minimumf %8, %7 : vector<32x2xf32>
    %c0_7 = arith.constant 0 : index
    %c0_8 = arith.constant 0 : index
    %10 = vector.load %arg3[%c0_7, %c0_8] : memref<16x32xf32, #tpu.memory_space<vmem>>, vector<16x32xf32>
    %cst_9 = arith.constant dense<0.000000e+00> : vector<16x2xf32>
    %11 = tpu.matmul %10, %9, %cst_9 {dimension_numbers = #tpu.dot_dimension_numbers<[1], [0], [0], [1], [0, 0, 1, 1], [], []>} : vector<16x32xf32>, vector<32x2xf32>, vector<16x2xf32> -> vector<16x2xf32>
    %c0_10 = arith.constant 0 : index
    %c0_11 = arith.constant 0 : index
    %12 = vector.load %arg4[%c0_10, %c0_11] : memref<16x1xf32, #tpu.memory_space<vmem>>, vector<16x1xf32>
    %13 = vector.broadcast %12 : vector<16x1xf32> to vector<16x2xf32>
    %14 = arith.addf %11, %13 : vector<16x2xf32>
    %cst_12 = arith.constant dense<0xFF800000> : vector<2xf32>
    %15 = vector.multi_reduction <maximumf>, %14, %cst_12 [0] : vector<16x2xf32> to vector<2xf32>
    %16 = vector.shape_cast %15 : vector<2xf32> to vector<1x2xf32>
    %17 = vector.broadcast %16 : vector<1x2xf32> to vector<16x2xf32>
    %18 = arith.subf %14, %17 : vector<16x2xf32>
    %19 = math.exp %18 : vector<16x2xf32>
    %cst_13 = arith.constant dense<0.000000e+00> : vector<2xf32>
    %20 = vector.multi_reduction <add>, %19, %cst_13 [0] : vector<16x2xf32> to vector<2xf32>
    %21 = vector.shape_cast %20 : vector<2xf32> to vector<1x2xf32>
    %cst_14 = arith.constant 1.000000e+00 : f32
    %22 = vector.broadcast %cst_14 : f32 to vector<1x2xf32>
    %23 = arith.divf %22, %21 : vector<1x2xf32>
    %24 = vector.broadcast %23 : vector<1x2xf32> to vector<16x2xf32>
    %25 = arith.mulf %19, %24 : vector<16x2xf32>
    %c0_15 = arith.constant 0 : index
    %c0_16 = arith.constant 0 : index
    %26 = vector.load %arg5[%c0_15, %c0_16] : memref<16x2xf32, #tpu.memory_space<vmem>>, vector<16x2xf32>
    tpu.vector_store %arg5[%c0_15, %c0_16], %25 {strides = array<i32>} : memref<16x2xf32, #tpu.memory_space<vmem>>, vector<16x2xf32>,
    return
  }
}

</mosaic_0001>

<bundles_post_ra>
// kernel: tpu_custom_call.1
= control target key start
LH: loop header
LB: loop body
LE: loop exit
PB: predicated region body
PF: predicated region fallthrough
CT: control target
= control target key end

     0   :  { %vm49_vm0 = vcmask 64512   ;;  %v339_v3 = vmov 0   ;;  %vm169_vm1 = vcmask 261120   ;;  %vm251_vm2 = vcmask 15360   ;;  %s427_s0 = inlined_call_operand.vmem [shape: f32[8,2], index: 0, kind: input, shape index: {}]   ;;  %s428_s1 = inlined_call_operand.vmem [shape: f32[32,8], index: 1, kind: input, shape index: {}]   ;;  %s429_s2 = inlined_call_operand.vmem [shape: f32[32,1], index: 2, kind: input, shape index: {}]   ;;  %s430_s4 = inlined_call_operand.vmem [shape: f32[16,1], index: 4, kind: input, shape index: {}]   ;;  %s431_s3 = inlined_call_operand.vmem [shape: f32[16,32], index: 3, kind: input, shape index: {}]   ;;  %s432_s5 = inlined_call_operand.vmem [shape: f32[16,2], index: 5, kind: output, shape index: {}]  }
   0x1   :  { %v20_v0 = vld [vmem:[%s427_s0] sm:$0xff]  ;;  %v22_v2 = vld [vmem:[%s428_s1 + $0x8] sm:$0xff]  ;;  %331 = vset.pattern.permute.xlu0 %v339_v3  ;;  %332 = vset.pattern.permute.xlu1 %v339_v3  ;;  %v23_v4 = vld [vmem:[%s428_s1 + $0x10] sm:$0xff] }
   0x2   :  { %v21_v1 = vld [vmem:[%s428_s1] sm:$0xff]  ;;  %303 = vmatprep.subr.mxu0 %v20_v0  ;;  %v27_v6 = vld [vmem:[%s429_s2 + $0x10] sm:$0xff]  ;;  %v26_v7 = vld [vmem:[%s429_s2 + $0x8] sm:$0xff] }
   0x3   :  { %305 = vmatprep.mubr.msk.f32.mxu0 %vm49_vm0, %v21_v1  ;;  %v25_v5 = vld [vmem:[%s429_s2] sm:$0xff]  ;;  %304 = vmatpush3.msra.mxu0 %v20_v0  ;;  %v24_v8 = vld [vmem:[%s428_s1 + $0x18] sm:$0xff]  ;;  %v158_v11 = vld [vmem:[%s430_s4 + $0x8] sm:$0xff] }
   0x4   :  { %31 = vperm.xlu0 %331, %v25_v5   ;;  %306 = vmatmul.mubr.msk.f32.vlgmr.msra.gmra.mrb[0].mxu0 %vm49_vm0, %v22_v2  ;;  %v28_v9 = vld [vmem:[%s429_s2 + $0x18] sm:$0xff]  ;;  %v157_v10 = vld [vmem:[%s430_s4] sm:$0xff]  ;;  %v156_v35 = vld [vmem:[%s431_s3 + $0x8] sm:$0xff] }
   0x5   :  { %41 = vperm.xlu1 %332, %v27_v6   ;;  %308 = vmatprep.mubr.msk.f32.mxu0 %vm49_vm0, %v23_v4  ;;  %v155_v12 = vld [vmem:[%s431_s3] sm:$0xff] }
   0x6   :  { %319 = vmatprep.mubr.msk.f32.mxu1 %vm169_vm1, %v155_v12 }
   0x8   :  { %36 = vperm.xlu0 %331, %v26_v7   ;;  %309 = vmatmul.mubr.msk.f32.gmra.mrb[2].mxu0 %vm49_vm0, %v24_v8 }
   0x9   :  { %46 = vperm.xlu1 %332, %v28_v9  }
   0xc   :  { %161 = vperm.xlu0 %331, %v157_v10  }
   0xd   :  { %166 = vperm.xlu1 %332, %v158_v11  }
  0x83   :  { %v32_v13 = vpop.permute.xlu0 %31 }
  0x84   :  { %v42_v14 = vpop.permute.xlu1 %41 }
  0x87   :  { %v37_v15 = vpop.permute.xlu0 %36 }
  0x88   :  { %v47_v21 = vpop.permute.xlu1 %46 }
  0x8b   :  { %v162_v38 = vpop.permute.xlu0 %161 }
  0x8c   :  { %v167_v36 = vpop.permute.xlu1 %166 }
  0xd7   :  { %v307_v16 = vpop.f32.mrb[0].mxu0 }
  0xd8   :  { %v134_v17 = vadd.f32 %v307_v16, %v37_v15  ;;  %v128_v18 = vpop.f32.mrb[1].mxu0 }
  0xd9   :  { %v129_v19 = vadd.f32 %v128_v18, %v32_v13 }
  0xda   :  { %v148_v20 = vmax.f32 %v134_v17, 0.0 }
  0xdb   :  { %v147_v22 = vmax.f32 %v129_v19, 0.0  ;;  %v310_v23 = vpop.f32.mrb[2].mxu0 }
  0xdc   :  { %v152_v24 = vmin.f32 %v148_v20, 6.0  ;;  %v144_v25 = vadd.f32 %v310_v23, %v47_v21  ;;  %v138_v26 = vpop.f32.mrb[3].mxu0 }
  0xdd   :  { %v151_v27 = vmin.f32 %v147_v22, 6.0  ;;  %v139_v28 = vadd.f32 %v138_v26, %v42_v14 }
  0xde   :  { %v150_v29 = vmax.f32 %v144_v25, 0.0 }
  0xdf   :  { %v149_v30 = vmax.f32 %v139_v28, 0.0  ;;  %v322_v31 = vpack.c.bf16 %v152_v24, %v151_v27 }
  0xe0   :  { %v154_v32 = vmin.f32 %v150_v29, 6.0 }
  0xe1   :  { %v153_v33 = vmin.f32 %v149_v30, 6.0  ;;  %323 = vmatprep.subr.bf16.mxu1 %v322_v31 }
  0xe2   :  { %325 = vmatpush3.bf16.msra.mxu1 %v322_v31 }
  0xe3   :  { %v326_v34 = vpack.c.bf16 %v154_v32, %v153_v33 }
  0xe5   :  { %327 = vmatprep.subr.bf16.mxu1 %v326_v34 }
  0xe6   :  { %329 = vmatpush3.bf16.msra.mxu1 %v326_v34 }
  0xe9   :  { %320 = vmatmul.mubr.msk.f32.vlgmr.msra.gmra.mrb[0].mxu1 %vm169_vm1, %v156_v35 }
 0x1bc   :  { %v321_v37 = vpop.f32.mrb[0].mxu1 }
 0x1bd   :  { %v248_v39 = vadd.f32 %v321_v37, %v167_v36  ;;  %v242_v40 = vpop.f32.mrb[1].mxu1 }
 0x1be   :  { %v243_v41 = vadd.f32 %v242_v40, %v162_v38 }
 0x1bf   :  { %v253_v42 = vsel %vm251_vm2, %v248_v39, -inf }
 0x1c0   :  { %v252_v43 = vsel %vm251_vm2, %v243_v41, -inf }
 0x1c1   :  { %v254_v44 = vmax.f32 %v252_v43, %v253_v42 }
 0x1c3   :  { %v255_v45 = vrot.slane %v254_v44, 4 }
 0x1c5   :  { %v256_v46 = vmax.f32 %v254_v44, %v255_v45 }
 0x1c7   :  { %v257_v47 = vrot.slane %v256_v46, 2 }
 0x1c9   :  { %v258_v48 = vmax.f32 %v256_v46, %v257_v47 }
 0x1cb   :  { %v259_v49 = vrot.slane %v258_v48, 1 }
 0x1cd   :  { %v260_v50 = vmax.f32 %v258_v48, %v259_v49 }
 0x1cf   :  { %v261_v51 = vsub.f32 %v243_v41, %v260_v50  ;;  %v262_v52 = vsub.f32 %v248_v39, %v260_v50 }
 0x1d1   :  { %v263_v53 = vmul.f32 1.442695, %v261_v51  ;;  %v265_v54 = vmul.f32 1.442695, %v262_v52 }
 0x1d3   :  { %333 = vpow2.f32 %v263_v53 }
 0x1d4   :  { %335 = vpow2.f32 %v265_v54 }
 0x1dd   :  { %v334_v55 = vpop.eup %333 }
 0x1de   :  { %v336_v56 = vpop.eup %335  ;;  %v267_v57 = vsel %vm251_vm2, %v334_v55, 0.0 }
 0x1df   :  { %v268_v58 = vsel %vm251_vm2, %v336_v56, 0.0 }
 0x1e0   :  { %v269_v59 = vadd.f32 %v268_v58, %v267_v57 }
 0x1e2   :  { %v270_v60 = vrot.slane %v269_v59, 4 }
 0x1e4   :  { %v271_v61 = vadd.f32 %v270_v60, %v269_v59 }
 0x1e6   :  { %v272_v62 = vrot.slane %v271_v61, 2 }
 0x1e8   :  { %v273_v63 = vadd.f32 %v272_v62, %v271_v61 }
 0x1ea   :  { %v274_v0 = vrot.slane %v273_v63, 1 }
 0x1ec   :  { %v275_v1 = vadd.f32 %v274_v0, %v273_v63 }
 0x1ee   :  { %337 = vrcp.f32 %v275_v1 }
 0x1f8   :  { %v338_v2 = vpop.eup %337 }
 0x1f9   :  { %v278_v3 = vmul.f32 %v338_v2, %v334_v55  ;;  %v279_v4 = vmul.f32 %v338_v2, %v336_v56 }
 0x1fb   :  { %280 = vst.msk [vmem:[%s432_s5] sm:$0xff] %vm251_vm2, %v278_v3  ;;  %281 = vst.msk [vmem:[%s432_s5 + $0x8] sm:$0xff] %vm251_vm2, %v279_v4 }

</bundles_post_ra>
